<compile_context>
chip_gen: v7x
topology: tpu7x:2x2x1
jax: 0.10.0
libtpu: 0.0.40
codegen_flags: <defaults>
</compile_context>

<pallas_src>
import math
import jax
import jax.numpy as jnp
from jax.experimental import pallas as pl
from jax.experimental.pallas import tpu as pltpu


def _round_up(x, m):
    return ((x + m - 1) // m) * m


def _cdiv(a, b):
    return -(-a // b)


def _gelu_erf(h):
    # Exact (erf-form) GELU, matching torch.nn.GELU() default.
    # TODO(synk): if targeting HF GPT-2 (gelu_new), switch to the tanh approximation
    # (jax.nn.gelu(h, approximate=True)) - cheaper on TPU (EUP slot) when compute-bound.
    return 0.5 * h * (1.0 + jax.lax.erf(h * (1.0 / math.sqrt(2.0))))


def mlp_kernel_resident(x_ref, wfc_ref, bfc_ref, wproj_ref, bproj_ref, o_ref):
    """Whole-weight-resident path: 1-D grid over token tiles; weights DMA'd once.

    x_ref     : [tm, D]      bf16
    wfc_ref   : [D, H]       bf16   (resident across token tiles)
    bfc_ref   : [1, H]       f32
    wproj_ref : [H, D]       bf16   (resident across token tiles)
    bproj_ref : [1, D]       f32
    o_ref     : [tm, D]      out_dtype
    """
    h = jnp.dot(x_ref[...], wfc_ref[...], preferred_element_type=jnp.float32)
    h = _gelu_erf(h + bfc_ref[...])
    y = jnp.dot(h.astype(wproj_ref.dtype), wproj_ref[...],
                preferred_element_type=jnp.float32)
    # Dropout: identity in eval mode.
    o_ref[...] = (y + bproj_ref[...]).astype(o_ref.dtype)


def mlp_kernel_chunked(x_ref, wfc_ref, bfc_ref, wproj_ref, bproj_ref, o_ref, acc_ref):
    """Hidden-chunk streaming path: 2-D grid (token tiles parallel, hidden chunks last).

    x_ref     : [tm, D]  bf16  (resident across hidden-chunk axis)
    wfc_ref   : [D, th]  bf16  (streamed W_fc column chunk)
    bfc_ref   : [1, th]  f32
    wproj_ref : [th, D]  bf16  (streamed W_proj row chunk)
    bproj_ref : [1, D]   f32
    o_ref     : [tm, D]  out_dtype (written only at the last chunk)
    acc_ref   : [tm, D]  f32 VMEM accumulator scratch
    """
    h_idx = pl.program_id(1)

    @pl.when(h_idx == 0)
    def _():
        acc_ref[...] = jnp.zeros_like(acc_ref)

    h = jnp.dot(x_ref[...], wfc_ref[...], preferred_element_type=jnp.float32)
    h = _gelu_erf(h + bfc_ref[...])
    acc_ref[...] += jnp.dot(h.astype(wproj_ref.dtype), wproj_ref[...],
                            preferred_element_type=jnp.float32)

    @pl.when(h_idx == pl.num_programs(1) - 1)
    def _():
        # Dropout: identity in eval mode.  Write output directly in the caller's dtype.
        o_ref[...] = (acc_ref[...] + bproj_ref[...]).astype(o_ref.dtype)


def mlp_pallas(x, w_fc, b_fc, w_proj, b_proj, *, tm=None, th=512,
               compute_dtype=jnp.bfloat16):
    """x: [M, D]; w_fc: [D, H]; b_fc: [H]; w_proj: [H, D]; b_proj: [D].

    Weights are stored pre-transposed as [in, out] so the kernel computes
    y = x @ W + b (matches PyTorch nn.Linear's x @ W^T + b).
    """
    M, D = x.shape
    H = w_fc.shape[1]
    out_dtype = x.dtype
    cbytes = jnp.dtype(compute_dtype).itemsize
    obytes = jnp.dtype(out_dtype).itemsize

    D_pad = _round_up(D, 128)          # lane-dense feature axis
    H_aligned = _round_up(H, 128)
    m_aligned = _round_up(M, 8)

    # ---- Generation-aware VMEM budget ---------------------------------------
    try:
        info = pltpu.get_tpu_info()
        phys_vmem = int(getattr(info, "vmem_capacity_bytes", 0)) or (64 << 20)
    except Exception:
        phys_vmem = 64 << 20           # conservative fallback (v7x per-TC VMEM)
    # ~100 MiB on 128 MiB parts (v5e/v6e), ~56 MiB on 64 MiB parts (v7x).
    vmem_budget = min(phys_vmem - (8 << 20), 100 << 20)

    # ---- Structure: weight-resident (DMA once) vs hidden-chunk streaming -----
    resident_w_bytes = 2 * 2 * D_pad * H_aligned * cbytes   # both weights, double-buffered
    use_resident = resident_w_bytes <= int(0.55 * vmem_budget)

    if use_resident:
        th = H_aligned
        H_pad = H_aligned
    else:
        th = min(_round_up(th, 128), H_aligned)
        H_pad = _round_up(H, th)

    # ---- Token tile: the knob that sets arithmetic intensity -----------------
    if tm is None:
        tm = 512 if use_resident else (1024 if vmem_budget >= (80 << 20) else 512)
    tm = max(8, min(_round_up(tm, 8), m_aligned))

    def footprint(tm_):
        wbuf = 2 * 2 * D_pad * th * cbytes               # W_fc + W_proj chunks, 2-buffered
        xbuf = 2 * tm_ * D_pad * cbytes                  # x tile, 2-buffered
        obuf = 2 * tm_ * D_pad * obytes                  # output tile, 2-buffered
        accb = 0 if use_resident else tm_ * D_pad * 4    # f32 accumulator scratch
        htmp = 2 * tm_ * th * 4                          # f32 intermediate + headroom
        bias = 2 * (th + D_pad) * 4
        return wbuf + xbuf + obuf + accb + htmp + bias

    while tm > 8 and footprint(tm) > vmem_budget:
        tm = max(8, _round_up(tm // 2, 8))

    # Megacore / v7x: keep >= 2 token tiles so the "parallel" axis can shard across TCs.
    if m_aligned >= 16 and _cdiv(m_aligned, tm) < 2:
        tm = _round_up(_cdiv(m_aligned, 2), 8)

    M_pad = _round_up(m_aligned, tm)

    # ---- Operand prep: skip padding copies when already aligned --------------
    def prep(a, shape, dtype):
        if a.ndim == 1:
            a = a.reshape(1, a.shape[0])
        if a.shape == shape:
            return a.astype(dtype)
        # Zero padding is exact: padded H columns give GELU(0)=0 and padded
        # W_proj rows/cols are zero, so padding contributes nothing to real outputs.
        return jnp.zeros(shape, dtype).at[:a.shape[0], :a.shape[1]].set(a.astype(dtype))

    xp = prep(x, (M_pad, D_pad), compute_dtype)
    wfcp = prep(w_fc, (D_pad, H_pad), compute_dtype)
    bfcp = prep(b_fc, (1, H_pad), jnp.float32)
    wprojp = prep(w_proj, (H_pad, D_pad), compute_dtype)
    bprojp = prep(b_proj, (1, D_pad), jnp.float32)

    n_tok_tiles = M_pad // tm
    w_bytes = (wfcp.size + wprojp.size) * cbytes
    cost = pl.CostEstimate(
        flops=int(4 * M_pad * D_pad * H_pad),            # two matmuls, 2 flops/MAC
        transcendentals=int(M_pad * H_pad),              # erf in the GELU
        bytes_accessed=int(xp.size * cbytes + M_pad * D_pad * obytes
                           + (bfcp.size + bprojp.size) * 4
                           + w_bytes * (1 if use_resident else n_tok_tiles)),
    )

    if use_resident:
        grid_spec = pltpu.PrefetchScalarGridSpec(
            num_scalar_prefetch=0,
            grid=(n_tok_tiles,),
            in_specs=[
                pl.BlockSpec((tm, D_pad), lambda i: (i, 0)),       # x tile
                pl.BlockSpec((D_pad, H_pad), lambda i: (0, 0)),    # W_fc (resident)
                pl.BlockSpec((1, H_pad), lambda i: (0, 0)),        # b_fc
                pl.BlockSpec((H_pad, D_pad), lambda i: (0, 0)),    # W_proj (resident)
                pl.BlockSpec((1, D_pad), lambda i: (0, 0)),        # b_proj
            ],
            out_specs=pl.BlockSpec((tm, D_pad), lambda i: (i, 0)),
        )
        kernel = mlp_kernel_resident
        dim_sem = ("parallel",)
    else:
        grid_spec = pltpu.PrefetchScalarGridSpec(
            num_scalar_prefetch=0,
            grid=(n_tok_tiles, H_pad // th),   # token tiles (parallel), hidden chunks (reduction last)
            in_specs=[
                pl.BlockSpec((tm, D_pad), lambda i, h: (i, 0)),    # x tile (resident over h)
                pl.BlockSpec((D_pad, th), lambda i, h: (0, h)),    # W_fc column chunk
                pl.BlockSpec((1, th),     lambda i, h: (0, h)),    # b_fc chunk
                pl.BlockSpec((th, D_pad), lambda i, h: (h, 0)),    # W_proj row chunk
                pl.BlockSpec((1, D_pad),  lambda i, h: (0, 0)),    # b_proj
            ],
            out_specs=pl.BlockSpec((tm, D_pad), lambda i, h: (i, 0)),
            scratch_shapes=[pltpu.VMEM((tm, D_pad), jnp.float32)],
        )
        kernel = mlp_kernel_chunked
        dim_sem = ("parallel", "arbitrary")

    out = pl.pallas_call(
        kernel,
        out_shape=jax.ShapeDtypeStruct((M_pad, D_pad), out_dtype),
        grid_spec=grid_spec,
        compiler_params=pltpu.CompilerParams(
            dimension_semantics=dim_sem,
            vmem_limit_bytes=int(vmem_budget),
        ),
        cost_estimate=cost,
    )(xp, wfcp, bfcp, wprojp, bprojp)

    if M_pad == M and D_pad == D:
        return out
    return out[:M, :D]


def torch_linear_init(key, fan_in, fan_out):
    """Deterministic init mimicking PyTorch nn.Linear defaults (uniform +/- 1/sqrt(fan_in))."""
    kw, kb = jax.random.split(key)
    bound = 1.0 / math.sqrt(fan_in)
    # Stored as [in, out] (pre-transposed relative to torch's [out, in]).
    w = jax.random.uniform(kw, (fan_in, fan_out), jnp.float32, -bound, bound)
    b = jax.random.uniform(kb, (fan_out,), jnp.float32, -bound, bound)
    return w, b


def mlp_reference(x, w_fc, b_fc, w_proj, b_proj):
    h = jnp.dot(x, w_fc, preferred_element_type=jnp.float32) + b_fc
    h = 0.5 * h * (1.0 + jax.lax.erf(h / jnp.sqrt(2.0)))
    return jnp.dot(h.astype(w_proj.dtype), w_proj,
                   preferred_element_type=jnp.float32) + b_proj


if __name__ == "__main__":
    # Small GPT-2-like config: batch=2, seq=8, n_embed=32 -> hidden=128.
    B, T, D = 2, 8, 32
    H = 4 * D

    key = jax.random.PRNGKey(0)
    kx, kfc, kproj = jax.random.split(key, 3)

    x_btd = jax.random.normal(kx, (B, T, D), jnp.float32)
    w_fc, b_fc = torch_linear_init(kfc, D, H)
    w_proj, b_proj = torch_linear_init(kproj, H, D)

    # Flatten tokens for the kernel: [B*T, D]
    x2d = x_btd.reshape(B * T, D)

    out2d = mlp_pallas(x2d, w_fc, b_fc, w_proj, b_proj)
    out = out2d.reshape(B, T, D)
    jax.block_until_ready(out)

    # Check against a pure-JAX reference using the same bf16-input / f32-accumulate
    # numerics as the kernel (tight tolerance)...
    ref_bf16 = mlp_reference(
        x2d.astype(jnp.bfloat16), w_fc.astype(jnp.bfloat16), b_fc,
        w_proj.astype(jnp.bfloat16), b_proj).reshape(B, T, D)
    assert jnp.allclose(out.astype(jnp.float32), ref_bf16, atol=1e-3, rtol=1e-3), \
        "mismatch vs bf16 reference"

    # ...and a looser sanity check against the full-f32 reference (bf16 inputs
    # introduce ~1% relative error by construction).
    ref_f32 = mlp_reference(x2d, w_fc, b_fc, w_proj, b_proj).reshape(B, T, D)
    assert jnp.allclose(out.astype(jnp.float32), ref_f32, atol=5e-2, rtol=5e-2), \
        "mismatch vs f32 reference"

    print("KERNEL_OK")
</pallas_src>

<mosaic_0001>
module attributes {stable_mosaic.version = 11 : i64} {
  func.func @mlp_kernel_resident(%arg0: i32, %arg1: memref<8x128xbf16, #tpu.memory_space<vmem>>, %arg2: memref<128x128xbf16, #tpu.memory_space<vmem>>, %arg3: memref<1x128xf32, #tpu.memory_space<vmem>>, %arg4: memref<128x128xbf16, #tpu.memory_space<vmem>>, %arg5: memref<1x128xf32, #tpu.memory_space<vmem>>, %arg6: memref<8x128xf32, #tpu.memory_space<vmem>>) attributes {dimension_semantics = [#tpu.dimension_semantics<parallel>], iteration_bounds = array<i64: 2>, scalar_prefetch = 0 : i64, scratch_operands = 0 : i64, tpu.core_type = #tpu.core_type<tc>, window_params = [{transform_indices = @transform_0, window_bounds = array<i64: 8, 128>}, {pipeline_mode = #tpu.pipeline_mode<synchronous>, transform_indices = @transform_1, window_bounds = array<i64: 128, 128>}, {pipeline_mode = #tpu.pipeline_mode<synchronous>, transform_indices = @transform_2, window_bounds = array<i64: 1, 128>}, {pipeline_mode = #tpu.pipeline_mode<synchronous>, transform_indices = @transform_3, window_bounds = array<i64: 128, 128>}, {pipeline_mode = #tpu.pipeline_mode<synchronous>, transform_indices = @transform_4, window_bounds = array<i64: 1, 128>}, {transform_indices = @transform_5, window_bounds = array<i64: 8, 128>}]} {
    %c0 = arith.constant 0 : index
    %c0_0 = arith.constant 0 : index
    %0 = vector.load %arg1[%c0, %c0_0] : memref<8x128xbf16, #tpu.memory_space<vmem>>, vector<8x128xbf16>
    %c0_1 = arith.constant 0 : index
    %c0_2 = arith.constant 0 : index
    %1 = vector.load %arg2[%c0_1, %c0_2] : memref<128x128xbf16, #tpu.memory_space<vmem>>, vector<128x128xbf16>
    %cst = arith.constant dense<0.000000e+00> : vector<8x128xf32>
    %2 = tpu.matmul %0, %1, %cst {dimension_numbers = #tpu.dot_dimension_numbers<[1], [0], [0], [1], [0, 0, 1, 1], [], []>} : vector<8x128xbf16>, vector<128x128xbf16>, vector<8x128xf32> -> vector<8x128xf32>
    %c0_3 = arith.constant 0 : index
    %c0_4 = arith.constant 0 : index
    %3 = vector.load %arg3[%c0_3, %c0_4] : memref<1x128xf32, #tpu.memory_space<vmem>>, vector<1x128xf32>
    %4 = vector.broadcast %3 : vector<1x128xf32> to vector<8x128xf32>
    %5 = arith.addf %2, %4 : vector<8x128xf32>
    %cst_5 = arith.constant 5.000000e-01 : f32
    %6 = vector.broadcast %cst_5 : f32 to vector<8x128xf32>
    %7 = arith.mulf %6, %5 : vector<8x128xf32>
    %cst_6 = arith.constant 0.707106769 : f32
    %8 = vector.broadcast %cst_6 : f32 to vector<8x128xf32>
    %9 = arith.mulf %5, %8 : vector<8x128xf32>
    %10 = math.erf %9 : vector<8x128xf32>
    %cst_7 = arith.constant 1.000000e+00 : f32
    %11 = vector.broadcast %cst_7 : f32 to vector<8x128xf32>
    %12 = arith.addf %11, %10 : vector<8x128xf32>
    %13 = arith.mulf %7, %12 : vector<8x128xf32>
    %14 = arith.truncf %13 : vector<8x128xf32> to vector<8x128xbf16>
    %c0_8 = arith.constant 0 : index
    %c0_9 = arith.constant 0 : index
    %15 = vector.load %arg4[%c0_8, %c0_9] : memref<128x128xbf16, #tpu.memory_space<vmem>>, vector<128x128xbf16>
    %cst_10 = arith.constant dense<0.000000e+00> : vector<8x128xf32>
    %16 = tpu.matmul %14, %15, %cst_10 {dimension_numbers = #tpu.dot_dimension_numbers<[1], [0], [0], [1], [0, 0, 1, 1], [], []>} : vector<8x128xbf16>, vector<128x128xbf16>, vector<8x128xf32> -> vector<8x128xf32>
    %c0_11 = arith.constant 0 : index
    %c0_12 = arith.constant 0 : index
    %17 = vector.load %arg5[%c0_11, %c0_12] : memref<1x128xf32, #tpu.memory_space<vmem>>, vector<1x128xf32>
    %18 = vector.broadcast %17 : vector<1x128xf32> to vector<8x128xf32>
    %19 = arith.addf %16, %18 : vector<8x128xf32>
    %c0_13 = arith.constant 0 : index
    %c0_14 = arith.constant 0 : index
    %20 = vector.load %arg6[%c0_13, %c0_14] : memref<8x128xf32, #tpu.memory_space<vmem>>, vector<8x128xf32>
    tpu.vector_store %arg6[%c0_13, %c0_14], %19 {strides = array<i32>} : memref<8x128xf32, #tpu.memory_space<vmem>>, vector<8x128xf32>,
    return
  }
  func.func @transform_0(%arg0: i32) -> (i32, i32) {
    %c0_i32 = arith.constant 0 : i32
    %c0_i32_0 = arith.constant 0 : i32
    return %arg0, %c0_i32 : i32, i32
  }
  func.func @transform_1(%arg0: i32) -> (i32, i32) {
    %c0_i32 = arith.constant 0 : i32
    %c0_i32_0 = arith.constant 0 : i32
    %c0_i32_1 = arith.constant 0 : i32
    return %c0_i32, %c0_i32_0 : i32, i32
  }
  func.func @transform_2(%arg0: i32) -> (i32, i32) {
    %c0_i32 = arith.constant 0 : i32
    %c0_i32_0 = arith.constant 0 : i32
    %c0_i32_1 = arith.constant 0 : i32
    return %c0_i32, %c0_i32_0 : i32, i32
  }
  func.func @transform_3(%arg0: i32) -> (i32, i32) {
    %c0_i32 = arith.constant 0 : i32
    %c0_i32_0 = arith.constant 0 : i32
    %c0_i32_1 = arith.constant 0 : i32
    return %c0_i32, %c0_i32_0 : i32, i32
  }
  func.func @transform_4(%arg0: i32) -> (i32, i32) {
    %c0_i32 = arith.constant 0 : i32
    %c0_i32_0 = arith.constant 0 : i32
    %c0_i32_1 = arith.constant 0 : i32
    return %c0_i32, %c0_i32_0 : i32, i32
  }
  func.func @transform_5(%arg0: i32) -> (i32, i32) {
    %c0_i32 = arith.constant 0 : i32
    %c0_i32_0 = arith.constant 0 : i32
    return %arg0, %c0_i32 : i32, i32
  }
}

</mosaic_0001>

<bundles_post_ra>
// kernel: tpu_custom_call.1
= control target key start
LH: loop header
LB: loop body
LE: loop exit
PB: predicated region body
PF: predicated region fallthrough
CT: control target
= control target key end

     0   :  { %10 = vsyncpa [#allocation3], 0  ;;  %s1219_s0 = inlined_call_operand.hbm [shape: bf16[16,128], index: 0, kind: input, shape index: {}]   ;;  %s1220_s1 = inlined_call_operand.hbm [shape: bf16[128,128], index: 1, kind: input, shape index: {}]   ;;  %s1221_s2 = inlined_call_operand.vmem [shape: f32[1,128], index: 2, kind: input, shape index: {}]   ;;  %s1222_s3 = inlined_call_operand.hbm [shape: bf16[128,128], index: 3, kind: input, shape index: {}]   ;;  %s1223_s4 = inlined_call_operand.vmem [shape: f32[1,128], index: 4, kind: input, shape index: {}]   ;;  %s1224_s5 = inlined_call_operand.hbm [shape: f32[16,128], index: 5, kind: output, shape index: {}]  }
   0x1   :  { %12 = vsyncpa [#allocation3 + $0x1], 0 }
   0x2   :  { %13 = vsyncpa [#allocation6], 0 }
   0x3   :  { %14 = vsyncpa [#allocation4], 0 }
   0x4   :  { %16 = vsyncpa [#allocation4 + $0x1], 0  ;;  %s980_s18 = smov 0   ;;  %s982_s19 = smov 0  }
   0x5   :  { %s984_s20 = smov 0   ;;  %s986_s21 = smov 0  }
   0x6 LB: > { %s1001_s22 = sadd.s32 4294967295, %s940_s21   ;;  %s603_s23 = sadd.s32 4294967294, %s940_s21   ;;  %s940_s21 = sphi %s986_s21, %s1244_s21   ;;  %s936_s20 = sphi %s984_s20, %s1243_s20   ;;  %s932_s19 = sphi %s982_s19, %s1242_s19   ;;  %s928_s18 = sphi %s980_s18, %s1241_s18  }
   0x7   : > { %p42_p0 = scmp.ne.s32.totalorder %s932_s19, %s928_s18  ;;  %p1225_p1 = scmp.eq.s32.totalorder %s1001_s22, 0 }
   0x8   : > { %p156_p3 = scmp.eq.s32.totalorder %s603_s23, 1  ;;  %p604_p5 = scmp.ge.s32.totalorder %s940_s21, 1 }
   0x9   : > { %p1010_p4 = por %p1225_p1, %p42_p0  ;;  %p163_p7 = scmp.lt.s32.totalorder %s940_s21, 3 }
   0xa   : > { %p1015_p6 = por %p156_p3, %p42_p0  ;;  %s942_s27 = smov [#allocation5]  }
   0xb   : > { %s1228_s24 = scalar_select %p1010_p4, 1, 0 }
   0xc   : > { %s1229_s25 = scalar_select %p1015_p6, 1, 0 }
   0xd   : > { %p1020_p8 = pnand %p604_p5, %p163_p7  ;;  %s175_s28 = sshll.u32 %s942_s27, 4  ;;  %s1024_s28 = int_to_ptr.vmem [resolvable:$true] %s175_s28 }
   0xe   : > { %s943_s30 = smov [#allocation7]   ;;  %s784_s9 = scalar_lea.hbm %s1220_s1, 1024 }
   0xf   : > { %p707_p9 = pneg %p1020_p8  ;;  %s191_s6 = sshll.u32 %s943_s30, 4  ;;  %s1035_s6 = int_to_ptr.vmem [resolvable:$true] %s191_s6 }
  0x10   : > { %p785_p12 = scmp.ne.s32.totalorder %s1220_s1, %s784_s9  ;;  %p791_p5 = scmp.lt.u32.totalorder %s784_s9, %s1220_s1 }
  0x11   : > { %p1031_p11 = pnand %p707_p9, %p1225_p1 }
  0x13   : > { %p786_p13 = pneg %p1031_p11 }
  0x15   : > { %p787_p0 = pnand %p786_p13, %p785_p12 }
  0x17   : > { %p788_p3 = pneg %p787_p0 }
  0x19   : > { %p793_p7 = pnand %p791_p5, %p788_p3 }
  0x1b   : > { %796 = shalt.err (!%p793_p7)
}
  0x1c   : > { %s797_s14 = scalar_lea.vmem %s1024_s28, 1024  ;;  %p805_p2 = scmp.lt.s32.totalorder %s1024_s28, %s1024_s28 }
  0x1d   : > { %p798_p9 = scmp.ne.s32.totalorder %s1024_s28, %s797_s14  ;;  %p806_p12 = scmp.lt.s32.totalorder %s797_s14, %s797_s14 }
  0x1f   : > { %p800_p10 = pnand %p798_p9, %p786_p13  ;;  %p807_p0 = por %p806_p12, %p805_p2 }
  0x21   : > { %p801_p1 = pneg %p800_p10 }
  0x23   : > { %p808_p6 = pnand %p807_p0, %p801_p1 }
  0x25   : > { %811 = shalt.err (!%p808_p6)
}
  0x26   : > { %s944_s15 = smov 64   ;;  %s945_s16 = smov 4  }
  0x27   : > { %710 = dma.hbm_to_vmem [thread:$0]  (!%p1031_p11), %s1220_s1, 1024, %s1024_s28, [#allocation6], %s944_s15, %s944_s15, %s945_s16  }
  0x28   : > { %s812_s7 = scalar_lea.hbm %s1222_s3, 1024 }
  0x29   : > { %p813_p2 = scmp.ne.s32.totalorder %s1222_s3, %s812_s7  ;;  %p819_p10 = scmp.lt.u32.totalorder %s812_s7, %s1222_s3 }
  0x2b   : > { %p815_p1 = pnand %p813_p2, %p786_p13 }
  0x2d   : > { %p816_p6 = pneg %p815_p1 }
  0x2f   : > { %p821_p3 = pnand %p819_p10, %p816_p6 }
  0x31   : > { %824 = shalt.err (!%p821_p3)
}
  0x32   : > { %s825_s28 = scalar_lea.vmem %s1035_s6, 1024  ;;  %p833_p12 = scmp.lt.s32.totalorder %s1035_s6, %s1035_s6 }
  0x33   : > { %p826_p5 = scmp.ne.s32.totalorder %s1035_s6, %s825_s28  ;;  %p834_p0 = scmp.lt.s32.totalorder %s825_s28, %s825_s28 }
  0x35   : > { %p828_p7 = pnand %p826_p5, %p786_p13  ;;  %p835_p2 = por %p834_p0, %p833_p12 }
  0x37   : > { %p829_p9 = pneg %p828_p7 }
  0x39   : > { %p836_p1 = pnand %p835_p2, %p829_p9 }
  0x3b   : > { %839 = shalt.err (!%p836_p1)
}
  0x3c   : > { %713 = dma.hbm_to_vmem [thread:$0]  (!%p1031_p11), %s1222_s3, 1024, %s1035_s6, [#allocation6], %s944_s15, %s944_s15, %s945_s16  }
  0x3d   : > { %s1090_s14 = sadd.s32 1, %s940_s21   ;;  %s29_s29 = sadd.s32 1, %s936_s20 }
  0x3e   : > { %s26_s17 = ssub.s32 %s940_s21, %s1090_s14  ;;  %p36_p13 = scmp.ne.s32.totalorder %s936_s20, %s932_s19 }
  0x3f   : > { %p27_p6 = scmp.eq.s32.totalorder %s26_s17, 0  ;;  %p37_p10 = scmp.eq.s32.totalorder %s940_s21, 0 }
  0x40   : > { %p1232_p3 = scmp.eq.s32.totalorder %s1001_s22, 1  ;;  %p724_p7 = scmp.lt.s32.totalorder %s940_s21, 2 }
  0x41   : > { %s1106_s27 = scalar_select %p27_p6, %s936_s20, %s29_s29  }
  0x42   : > { %p1100_p5 = por %p1232_p3, %p36_p13  ;;  %p38_p9 = por %p37_p10, %p36_p13 }
  0x43   : > { %s208_s30 = sand.u32 1, %s936_s20   ;;  %s609_s6 = sshll.u32 %s940_s21, 6 }
  0x44   : > { %s1233_s23 = scalar_select %p1100_p5, 1, 0 }
  0x45   : > { %s608_s7 = sshll.u32 %s208_s30, 2  ;;  %s1113_s8 = scalar_lea.hbm %s1219_s0, %s609_s6 }
  0x46   : > { %s212_s9 = scalar_lea.vmem [#allocation2], %s608_s7  ;;  %p1117_p11 = pnand %p724_p7, %p38_p9 }
  0x47   : > { %s219_s10 = sshll.u32 %s212_s9, 4  ;;  %s209_s28 = scalar_lea.sflag [#allocation3], %s208_s30  ;;  %s1115_s10 = int_to_ptr.vmem [resolvable:$true] %s219_s10 }
  0x48   : > { %s840_s12 = scalar_lea.hbm %s1113_s8, 64  ;;  %p842_p0 = pneg %p1117_p11 }
  0x49   : > { %p841_p12 = scmp.ne.s32.totalorder %s1113_s8, %s840_s12  ;;  %s845_s17 = scalar_lea.hbm %s1219_s0, 128 }
  0x4a   : > { %p846_p13 = scmp.lt.u32.totalorder %s1113_s8, %s1219_s0  ;;  %p847_p6 = scmp.lt.u32.totalorder %s845_s17, %s840_s12 }
  0x4b   : > { %p843_p2 = pnand %p842_p0, %p841_p12  ;;  %p849_p3 = scmp.lt.u32.totalorder %s840_s12, %s1113_s8 }
  0x4c   : > { %p848_p10 = por %p847_p6, %p846_p13 }
  0x4d   : > { %p844_p1 = pneg %p843_p2 }
  0x4e   : > { %p850_p7 = por %p849_p3, %p848_p10 }
  0x50   : > { %p851_p9 = pnand %p850_p7, %p844_p1 }
  0x52   : > { %854 = shalt.err (!%p851_p9)
}
  0x53   : > { %s855_s30 = scalar_lea.vmem %s1115_s10, 64  ;;  %s946_s15 = smov [#allocation2]  }
  0x54   : > { %p856_p12 = scmp.ne.s32.totalorder %s1115_s10, %s855_s30  ;;  %s860_s16 = sshll.u32 %s946_s15, 4  ;;  %s861_s16 = int_to_ptr.vmem [resolvable:$false] %s860_s16 }
  0x55   : > { %s862_s9 = scalar_lea.vmem %s861_s16, 128  ;;  %p863_p4 = scmp.lt.s32.totalorder %s1115_s10, %s861_s16 }
  0x56   : > { %p858_p2 = pnand %p856_p12, %p842_p0  ;;  %p864_p13 = scmp.lt.s32.totalorder %s862_s9, %s855_s30 }
  0x58   : > { %p859_p5 = pneg %p858_p2  ;;  %p865_p6 = por %p864_p13, %p863_p4 }
  0x5a   : > { %p866_p10 = pnand %p865_p6, %p859_p5 }
  0x5c   : > { %869 = shalt.err (!%p866_p10)
}
  0x5d   : > { %717 = dma.hbm_to_vmem [thread:$0]  (!%p1117_p11), %s1113_s8, 64, %s1115_s10, %s209_s28  }
  0x5e   : > { %228 = sbr.rel (%p1020_p8) target bundleno = 600 (0x258), region = 40  ;;  %s1149_s12 = sand.u32 (!%p1020_p8), 1, %s932_s19  }
  0x5f   : > { %s611_s13 = sshll.u32 (!%p1020_p8), %s1149_s12, 2  ;;  %s231_s29 = scalar_lea.sflag (!%p1020_p8), [#allocation3], %s1149_s12 }
  0x60   : > { %s1153_s17 = scalar_lea.vmem (!%p1020_p8), [#allocation2], %s611_s13  ;;  %p1235_p4 = scmp.ne.s32.totalorder (!%p1020_p8), %s1228_s24, 0 }
  0x65   : > { %915 = dma.done.wait (%p1235_p4), %s231_s29, 64  }
  0x66   : > { %917 = vsyncadd (%p1235_p4), %s231_s29, 4294967232  ;;  %p1236_p5 = scmp.eq.s32.totalorder %s1001_s22, 0 }
  0x68   : > { %919 = dma.done.wait (%p1236_p5), [#allocation6], 2048   ;;  %p1237_p8 = pmov %p1236_p5 }
  0x69   : > { %v947_v0 = vmov 0.0   ;;  %vm948_vm0 = vmmov 0   ;;  %v766_v1 = vld [vmem:[#allocation5] sm:$0xff]   ;;  %v767_v2 = vld [vmem:[#allocation5 + $0x8] sm:$0xff]   ;;  %v768_v3 = vld [vmem:[#allocation5 + $0x10] sm:$0xff]   ;;  %s614_s8 = sshll.u32 %s1149_s12, 3 }
  0x6a   : > { %921 = vsyncadd (%p1237_p8), [#allocation6], 4294965248  ;;  %655 = vmatprep.subr.bf16.mxu0 %v947_v0  ;;  %671 = vmatprep.mubr.msk.bf16.mxu0 %vm948_vm0, %v947_v0  ;;  %v774_v4 = vld [vmem:[#allocation7] sm:$0xff]   ;;  %v769_v5 = vld [vmem:[#allocation5 + $0x18] sm:$0xff]   ;;  %s634_s28 = sshll.u32 %s1001_s22, 7  ;;  %s268_s7 = scalar_lea.vmem [#allocation8], %s614_s8 }
  0x6b   : > { %675 = vmatprep.subr.bf16.mxu1 %v947_v0  ;;  %691 = vmatprep.mubr.msk.bf16.mxu1 %vm948_vm0, %v947_v0  ;;  %v775_v6 = vld [vmem:[#allocation7 + $0x8] sm:$0xff]   ;;  %v770_v7 = vld [vmem:[#allocation5 + $0x20] sm:$0xff]   ;;  %v776_v8 = vld [vmem:[#allocation7 + $0x10] sm:$0xff]   ;;  %s514_s6 = sshll.u32 %s268_s7, 4  ;;  %s1175_s16 = scalar_lea.hbm %s1224_s5, %s634_s28  ;;  %s1177_s6 = int_to_ptr.vmem [resolvable:$true] %s514_s6 }
  0x6c   : > { %656 = vmatpush3.bf16.msra.mxu0 %v766_v1  ;;  %676 = vmatpush3.bf16.msra.mxu1 %v774_v4  ;;  %v771_v9 = vld [vmem:[#allocation5 + $0x28] sm:$0xff]   ;;  %v772_v10 = vld [vmem:[#allocation5 + $0x30] sm:$0xff]   ;;  %v773_v11 = vld [vmem:[#allocation5 + $0x38] sm:$0xff]   ;;  %s501_s9 = scalar_lea.sflag [#allocation4], %s1149_s12  ;;  %s870_s22 = scalar_lea.vmem %s1177_s6, 128 }
  0x6d   : > { %657 = vmatprep.subr.bf16.mxu0 %v947_v0  ;;  %677 = vmatprep.subr.bf16.mxu1 %v947_v0  ;;  %v270_v12 = vld [vmem:[%s1153_s17] sm:$0xf]  ;;  %v778_v14 = vld [vmem:[#allocation7 + $0x20] sm:$0xff]   ;;  %v779_v15 = vld [vmem:[#allocation7 + $0x28] sm:$0xff]   ;;  %p871_p11 = scmp.ne.s32.totalorder %s1177_s6, %s870_s22  ;;  %p1238_p0 = scmp.ne.s32.totalorder %s1233_s23, 0 }
  0x6e   : > { %v777_v13 = vld [vmem:[#allocation7 + $0x18] sm:$0xff]   ;;  %v780_v16 = vld [vmem:[#allocation7 + $0x30] sm:$0xff]   ;;  %s949_s13 = smov [#allocation8]  }
  0x6f   : > { %v781_v17 = vld [vmem:[#allocation7 + $0x38] sm:$0xff]   ;;  %p872_p1 = pnand %p871_p11, %p1238_p0  ;;  %s874_s29 = sshll.u32 %s949_s13, 4  ;;  %s875_s29 = int_to_ptr.vmem [resolvable:$false] %s874_s29 }
  0x70   : > { %658 = vmatpush3.bf16.msra.mxu0 %v767_v2  ;;  %678 = vmatpush3.bf16.msra.mxu1 %v775_v6  ;;  %v615_v18 = vld [vmem:[%s1221_s2] ss:$0 sm:$0xff]  ;;  %s876_s17 = scalar_lea.vmem %s875_s29, 256  ;;  %p877_p7 = scmp.lt.s32.totalorder %s1177_s6, %s875_s29 }
  0x71   : > { %659 = vmatprep.subr.bf16.mxu0 %v947_v0  ;;  %679 = vmatprep.subr.bf16.mxu1 %v947_v0  ;;  %v624_v30 = vld [vmem:[%s1223_s4] ss:$0 sm:$0xff]  ;;  %p873_p3 = pneg %p872_p1  ;;  %p878_p9 = scmp.lt.s32.totalorder %s876_s17, %s870_s22 }
  0x73   : > { %p879_p12 = por %p878_p9, %p877_p7 }
  0x74   : > { %660 = vmatpush3.bf16.msra.mxu0 %v768_v3  ;;  %680 = vmatpush3.bf16.msra.mxu1 %v776_v8 }
  0x75   : > { %661 = vmatprep.subr.bf16.mxu0 %v947_v0  ;;  %681 = vmatprep.subr.bf16.mxu1 %v947_v0  ;;  %p880_p2 = pnand %p879_p12, %p873_p3 }
  0x78   : > { %662 = vmatpush3.bf16.msra.mxu0 %v769_v5  ;;  %682 = vmatpush3.bf16.msra.mxu1 %v777_v13 }
  0x79   : > { %663 = vmatprep.subr.bf16.mxu0 %v947_v0  ;;  %683 = vmatprep.subr.bf16.mxu1 %v947_v0 }
  0x7c   : > { %664 = vmatpush3.bf16.msra.mxu0 %v770_v7  ;;  %684 = vmatpush3.bf16.msra.mxu1 %v778_v14 }
  0x7d   : > { %665 = vmatprep.subr.bf16.mxu0 %v947_v0  ;;  %685 = vmatprep.subr.bf16.mxu1 %v947_v0 }
  0x80   : > { %666 = vmatpush3.bf16.msra.mxu0 %v771_v9  ;;  %686 = vmatpush3.bf16.msra.mxu1 %v779_v15 }
  0x81   : > { %667 = vmatprep.subr.bf16.mxu0 %v947_v0  ;;  %687 = vmatprep.subr.bf16.mxu1 %v947_v0 }
  0x84   : > { %668 = vmatpush3.bf16.msra.mxu0 %v772_v10  ;;  %688 = vmatpush3.bf16.msra.mxu1 %v780_v16 }
  0x85   : > { %669 = vmatprep.subr.bf16.mxu0 %v947_v0  ;;  %689 = vmatprep.subr.bf16.mxu1 %v947_v0 }
  0x88   : > { %670 = vmatpush3.bf16.msra.mxu0 %v773_v11  ;;  %690 = vmatpush3.bf16.msra.mxu1 %v781_v17 }
  0x8b   : > { %672 = vmatmul.mubr.bf16.vlgmr.msra.gmra.mrb[0].mxu0 %v270_v12 }
 0x15e   : > { %v376_v19 = vpop.f32.mrb[0].mxu0 }
 0x15f   : > { %v377_v20 = vadd.f32 %v615_v18, %v376_v19  ;;  %v673_v21 = vpop.f32.mrb[1].mxu0 }
 0x160   : > { %v379_v22 = vpop.f32.mrb[2].mxu0 }
 0x161   : > { %v383_v23 = vmul.f32 0.70710677, %v377_v20  ;;  %v674_v24 = vpop.f32.mrb[3].mxu0  ;;  %v382_v26 = vmul.f32 0.5, %v377_v20 }
 0x163   : > { %782 = verf.f32 %v383_v23 }
 0x16d   : > { %v783_v25 = vpop.eup %782 }
 0x16e   : > { %v385_v27 = vadd.f32 1.0, %v783_v25 }
 0x170   : > { %v386_v28 = vmul.f32 %v385_v27, %v382_v26 }
 0x172   : > { %v387_v29 = vpack.c.bf16 %v386_v28, %v386_v28 }
 0x174   : > { %692 = vmatmul.mubr.bf16.vlgmr.msra.gmra.mrb[0].mxu1 %v387_v29 }
 0x247   : > { %v493_v31 = vpop.f32.mrb[0].mxu1 }
 0x248   : > { %v494_v32 = vadd.f32 %v624_v30, %v493_v31  ;;  %v693_v33 = vpop.f32.mrb[1].mxu1 }
 0x249   : > { %v496_v34 = vpop.f32.mrb[2].mxu1 }
 0x24a   : > { %499 = vst [vmem:[%s268_s7] sm:$0xff] %v494_v32  ;;  %v694_v35 = vpop.f32.mrb[3].mxu1 }
 0x24b   : > { %883 = shalt.err (!%p880_p2)
}
 0x24c   : > { %s884_s12 = scalar_lea.hbm %s1175_s16, 128  ;;  %s888_s8 = scalar_lea.hbm %s1224_s5, 256 }
 0x24d   : > { %p885_p13 = scmp.ne.s32.totalorder %s1175_s16, %s884_s12  ;;  %p889_p4 = scmp.lt.u32.totalorder %s1175_s16, %s1224_s5 }
 0x24e   : > { %p890_p5 = scmp.lt.u32.totalorder %s888_s8, %s884_s12  ;;  %p892_p11 = scmp.lt.u32.totalorder %s884_s12, %s1175_s16 }
 0x24f   : > { %p886_p6 = pnand %p885_p13, %p1238_p0 }
 0x250   : > { %p891_p8 = por %p890_p5, %p889_p4 }
 0x251   : > { %p887_p10 = pneg %p886_p6 }
 0x252   : > { %p893_p1 = por %p892_p11, %p891_p8 }
 0x254   : > { %p894_p3 = pnand %p893_p1, %p887_p10 }
 0x256   : > { %897 = shalt.err (!%p894_p3)
}
 0x257   : > { %705 = dma.vmem_to_hbm [thread:$0]  (%p1238_p0), %s1177_s6, 128, %s1175_s16, %s501_s9  }
 0x258 PF: > { %s526_s28 = sand.u32 1, %s928_s18   ;;  %p1239_p7 = scmp.ne.s32.totalorder %s1229_s25, 0 }
 0x259   : > { %p1240_p9 = scmp.ge.s32.totalorder %s940_s21, 2  ;;  %s527_s7 = scalar_lea.sflag [#allocation4], %s526_s28 }
 0x25b   : > { %p719_p12 = pnand %p1240_p9, %p1239_p7 }
 0x25d   : > { %923 = dma.done.wait (!%p719_p12), %s527_s7, 128  }
 0x25e   : > { %925 = vsyncadd (!%p719_p12), %s527_s7, 4294967168  ;;  %p19_p2 = scmp.ge.s32.totalorder %s1090_s14, 4   ;;  %s1241_s18 = smov %s932_s19 }
 0x25f   : > { %s1242_s19 = smov %s936_s20  ;;  %s1243_s20 = smov %s1106_s27 }
 0x260   : > { %s1244_s21 = smov %s1090_s14  ;;  %21 = sbr.rel (!%p19_p2) target bundleno = 6 (0x6), region = 93 }
 0x267   :  { %532 = vsyncpa [#allocation3], 1 }
 0x268   :  { %534 = vsyncpa [#allocation3 + $0x1], 1 }
 0x269   :  { %535 = vsyncpa [#allocation6], 1 }
 0x26a   :  { %536 = vsyncpa [#allocation4], 1 }
 0x26b   :  { %538 = vsyncpa [#allocation4 + $0x1], 1 }

</bundles_post_ra>
